<compile_context>
chip_gen: v6e
topology: v6e:2x2x1
jax: 0.10.0
libtpu: 0.0.40
codegen_flags: <defaults>
</compile_context>

<pallas_src>
import jax
import jax.numpy as jnp
import numpy as np
from jax.experimental import pallas as pl
from jax.experimental.pallas import tpu as pltpu

EPS = 1e-5
LANE = 128                      # TPU lane width
_MAX_TIME_TILE = 12288          # cap per-step latency; budget handles VMEM


def _round_up(n, m):
    return ((n + m - 1) // m) * m


def _vmem_capacity_bytes():
    try:
        return int(pltpu.get_tpu_info().vmem_capacity_bytes)
    except Exception:
        return 64 * 1024 * 1024          # conservative: v7x per-TensorCore VMEM


def _estimate_vmem_bytes(tt, cin, cout, wf_cols, in_item, cdt_item, out_item):
    """Per-step VMEM estimate: double-buffered in/out blocks, double-buffered
    weight blocks, the maxpool scratch, and the materialized in-kernel f32
    intermediates (x cast, hr, h, res, conv2 out, y, pooled)."""
    tp = tt // 3
    x_blk = tt * cin * in_item
    out_blk = tp * cout * out_item
    w_blk = (cin * wf_cols + cout * cout) * cdt_item + 2 * cout * 4
    scratch = tt * cout * 4
    temps = (tt * cin * cdt_item              # in-kernel cast of x
             + tt * wf_cols * 4               # hr (fused conv1 | downsample)
             + 4 * tt * cout * 4              # h, res, conv2+bias, y
             + tt * cout * cdt_item           # h cast for second matmul
             + tp * cout * 4)                 # pooled result
    return 2 * (x_blk + out_blk) + 2 * w_blk + scratch + temps


def _choose_time_tile(T, B, cin, cout, wf_cols, in_item, cdt_item, out_item,
                      budget):
    """Largest time tile that divides T, keeps the pooled output block
    sublane-aligned (multiple of 24, or the full axis) and fits the VMEM
    budget.  Prefers tiles leaving >= 2 parallel grid steps (v7x megacore)."""
    cands = [d for d in range(24, T + 1, 24) if T % d == 0]
    if T % 3 == 0:
        cands.append(T)
    cands = sorted(set(cands))
    assert cands, "time axis must be a multiple of 3 after truncation"

    def fits(tt):
        return _estimate_vmem_bytes(tt, cin, cout, wf_cols,
                                    in_item, cdt_item, out_item) <= budget

    fitting = [c for c in cands if c <= _MAX_TIME_TILE and fits(c)]
    if not fitting:
        fitting = [c for c in cands if fits(c)]
    if not fitting:
        return cands[0]                       # best effort: smallest tile
    best = max(fitting)
    multi = [c for c in fitting if B * (T // c) >= 2]
    if B * (T // best) < 2 and multi:
        best = max(multi)                     # keep both TensorCores busy
    return best


def _resblock_kernel(alpha_ref,      # SMEM (2,) f32         : prelu1, prelu2
                     x_ref,          # VMEM (1, Tt, Cin)     : input dtype
                     wf_ref,         # VMEM (Cin, split+Cout): [conv1*BN1 | ds]
                     w2_ref,         # VMEM (Cout, Cout)     : conv2*BN2
                     b1_ref,         # VMEM (1, Cout) f32    : BN1 folded bias
                     b2_ref,         # VMEM (1, Cout) f32    : BN2 folded bias
                     o_ref,          # VMEM (1, Tt//3, Cout) : out dtype
                     y_scratch):     # VMEM (Tt, Cout) f32
    cout = w2_ref.shape[0]
    split = wf_ref.shape[1] - cout            # lane-aligned residual offset
    x = x_ref[0].astype(wf_ref.dtype)         # cast to MXU dtype in-kernel

    # conv1 (BN1 folded) and downsample conv fused over the same LHS tile.
    hr = jnp.dot(x, wf_ref[...], preferred_element_type=jnp.float32)
    h = hr[:, :cout] + b1_ref[...]            # conv1 + batch_norm1
    res = hr[:, split:]                       # residual path

    a1 = alpha_ref[0]
    h = jnp.where(h >= 0, h, a1 * h)          # prelu1

    h = jnp.dot(h.astype(w2_ref.dtype), w2_ref[...],
                preferred_element_type=jnp.float32) + b2_ref[...]   # conv2+BN2

    y = h + res
    a2 = alpha_ref[1]
    y = jnp.where(y >= 0, y, a2 * y)          # prelu2, (Tt, Cout) f32

    # MaxPool1d(3): VMEM scratch + three sublane-strided reads (no (T,3,C)
    # reshape / XLU relayout).
    y_scratch[...] = y
    tp = o_ref.shape[1]
    p0 = y_scratch[pl.ds(0, tp, stride=3), :]
    p1 = y_scratch[pl.ds(1, tp, stride=3), :]
    p2 = y_scratch[pl.ds(2, tp, stride=3), :]
    o_ref[0] = jnp.maximum(jnp.maximum(p0, p1), p2).astype(o_ref.dtype)


def _fold_bn_into_conv(w_oc_ic, gamma, beta, mean, var):
    """Fold eval-mode BatchNorm into a preceding bias-free 1x1 conv.
    w_oc_ic: (Cout, Cin).  Returns (Cin, Cout) folded weight, (Cout,) bias."""
    scale = gamma / jnp.sqrt(var + EPS)
    w_f = (w_oc_ic * scale[:, None]).T
    b_f = beta - mean * scale
    return w_f, b_f


def resblock_forward_ntc(x_ntc, params, *, compute_dtype=jnp.float32,
                         out_dtype=jnp.float32, time_tile=None):
    """x_ntc: (B, T, Cin).  Returns (B, T//3, Cout) in out_dtype (NTC).
    Primary API: keep activations NTC between blocks to skip transposes."""
    B, T, Cin = x_ntc.shape
    Cout = params["w1"].shape[0]

    # PyTorch MaxPool1d(3) silently drops the tail when T % 3 != 0.
    T3 = (T // 3) * 3
    if T3 != T:
        x_ntc = x_ntc[:, :T3, :]
        T = T3
    Tp = T // 3

    cdt = jnp.dtype(compute_dtype)
    odt = jnp.dtype(out_dtype)
    idt = jnp.dtype(x_ntc.dtype)

    # ---- fold eval-mode BN into the 1x1 convs -------------------------------
    w1_f, b1 = _fold_bn_into_conv(params["w1"][:, :, 0],
                                  params["bn1_gamma"], params["bn1_beta"],
                                  params["bn1_mean"], params["bn1_var"])
    w2_f, b2 = _fold_bn_into_conv(params["w2"][:, :, 0],
                                  params["bn2_gamma"], params["bn2_beta"],
                                  params["bn2_mean"], params["bn2_var"])
    w_ds = params.get("w_ds", None)
    if w_ds is not None:
        wds = jnp.transpose(w_ds[:, :, 0], (1, 0))           # (Cin, Cout)
    else:
        assert Cin == Cout, "identity residual requires in_dims == out_dims"
        wds = jnp.eye(Cin, dtype=jnp.float32)

    # Fuse conv1 with the downsample conv; residual columns start on a
    # lane-group boundary so the in-kernel split needs no lane shift.
    split = _round_up(Cout, LANE)
    w1_pad = jnp.pad(w1_f, ((0, 0), (0, split - Cout)))
    wf = jnp.concatenate([w1_pad, wds], axis=1).astype(cdt)   # (Cin, split+Cout)
    w2_c = w2_f.astype(cdt)                                   # (Cout, Cout)
    b1_r = b1.reshape(1, Cout).astype(jnp.float32)
    b2_r = b2.reshape(1, Cout).astype(jnp.float32)
    alphas = jnp.stack([params["prelu1_a"], params["prelu2_a"]]).astype(jnp.float32)
    wf_cols = split + Cout

    # ---- time tiling with per-generation VMEM budget ------------------------
    capacity = _vmem_capacity_bytes()
    budget = int(capacity * 0.7)
    if time_tile is None:
        Tt = _choose_time_tile(T, B, Cin, Cout, wf_cols,
                               idt.itemsize, cdt.itemsize, odt.itemsize, budget)
    else:
        Tt = int(time_tile)
    assert T % Tt == 0 and Tt % 3 == 0
    assert Tt == T or Tt % 24 == 0, "time tile must be a multiple of 24"
    Tp_t = Tt // 3
    grid = (B, T // Tt)

    est = _estimate_vmem_bytes(Tt, Cin, Cout, wf_cols,
                               idt.itemsize, cdt.itemsize, odt.itemsize)
    vmem_limit = int(min(capacity * 0.9,
                         max(est * 1.25 + (2 << 20), 16 << 20)))

    cost = pl.CostEstimate(
        flops=2 * B * T * Cin * wf_cols + 2 * B * T * Cout * Cout,
        transcendentals=0,
        bytes_accessed=(B * T * Cin * idt.itemsize
                        + B * Tp * Cout * odt.itemsize
                        + wf.size * cdt.itemsize + w2_c.size * cdt.itemsize
                        + 2 * Cout * 4),
    )

    out = pl.pallas_call(
        _resblock_kernel,
        out_shape=jax.ShapeDtypeStruct((B, Tp, Cout), odt),
        grid_spec=pltpu.PrefetchScalarGridSpec(
            num_scalar_prefetch=1,                             # alphas -> SMEM
            grid=grid,
            in_specs=[
                pl.BlockSpec((1, Tt, Cin), lambda b, t, a: (b, t, 0)),      # x
                pl.BlockSpec((Cin, wf_cols), lambda b, t, a: (0, 0)),       # wf
                pl.BlockSpec((Cout, Cout), lambda b, t, a: (0, 0)),         # w2
                pl.BlockSpec((1, Cout), lambda b, t, a: (0, 0)),            # b1
                pl.BlockSpec((1, Cout), lambda b, t, a: (0, 0)),            # b2
            ],
            out_specs=pl.BlockSpec((1, Tp_t, Cout), lambda b, t, a: (b, t, 0)),
            scratch_shapes=[pltpu.VMEM((Tt, Cout), jnp.float32)],
        ),
        compiler_params=pltpu.CompilerParams(
            dimension_semantics=("parallel", "parallel"),
            vmem_limit_bytes=vmem_limit),
        cost_estimate=cost,
    )(alphas, x_ntc, wf, w2_c, b1_r, b2_r)
    return out


def resblock_forward(x_ncl, params, **kwargs):
    """x_ncl: (B, Cin, T).  Returns (B, Cout, T//3) (NCL).
    NOTE: if the surrounding graph can keep activations NTC, call
    resblock_forward_ntc directly and skip both HBM-level transposes."""
    x_ntc = jnp.transpose(x_ncl, (0, 2, 1))
    out_ntc = resblock_forward_ntc(x_ntc, params, **kwargs)
    return jnp.transpose(out_ntc, (0, 2, 1))


def _reference_forward(x_ncl, params):
    """Plain-JAX reference reproducing the PyTorch forward (eval-mode BN)."""
    x = jnp.transpose(x_ncl, (0, 2, 1))                      # (B, T, Cin)
    w1 = jnp.transpose(params["w1"][:, :, 0], (1, 0))
    w2 = jnp.transpose(params["w2"][:, :, 0], (1, 0))

    def bn(h, g, b, m, v):
        return (h - m) / jnp.sqrt(v + EPS) * g + b

    def prelu(h, a):
        return jnp.where(h >= 0, h, a * h)

    h = x @ w1
    h = bn(h, params["bn1_gamma"], params["bn1_beta"],
           params["bn1_mean"], params["bn1_var"])
    h = prelu(h, params["prelu1_a"])
    h = h @ w2
    h = bn(h, params["bn2_gamma"], params["bn2_beta"],
           params["bn2_mean"], params["bn2_var"])
    if params.get("w_ds", None) is not None:
        res = x @ jnp.transpose(params["w_ds"][:, :, 0], (1, 0))
    else:
        res = x
    y = prelu(h + res, params["prelu2_a"])
    B, T, Cout = y.shape
    T3 = (T // 3) * 3
    y = y[:, :T3].reshape(B, T3 // 3, 3, Cout).max(axis=2)
    return jnp.transpose(y, (0, 2, 1))


if __name__ == "__main__":
    key = jax.random.PRNGKey(0)
    B, Cin, Cout, T = 2, 4, 8, 48

    keys = jax.random.split(key, 12)
    params = {
        # Conv1d weights: (out_channels, in_channels, kernel_size=1)
        "w1":   jax.random.normal(keys[0], (Cout, Cin, 1), jnp.float32) * 0.2,
        "w2":   jax.random.normal(keys[1], (Cout, Cout, 1), jnp.float32) * 0.2,
        "w_ds": jax.random.normal(keys[2], (Cout, Cin, 1), jnp.float32) * 0.2,
        # BatchNorm1d params (eval-mode running stats)
        "bn1_gamma": jax.random.normal(keys[3], (Cout,), jnp.float32) * 0.1 + 1.0,
        "bn1_beta":  jax.random.normal(keys[4], (Cout,), jnp.float32) * 0.1,
        "bn1_mean":  jax.random.normal(keys[5], (Cout,), jnp.float32) * 0.1,
        "bn1_var":   jax.nn.softplus(jax.random.normal(keys[6], (Cout,), jnp.float32)) + 0.5,
        "bn2_gamma": jax.random.normal(keys[7], (Cout,), jnp.float32) * 0.1 + 1.0,
        "bn2_beta":  jax.random.normal(keys[8], (Cout,), jnp.float32) * 0.1,
        "bn2_mean":  jax.random.normal(keys[9], (Cout,), jnp.float32) * 0.1,
        "bn2_var":   jax.nn.softplus(jax.random.normal(keys[10], (Cout,), jnp.float32)) + 0.5,
        # PReLU scalars (PyTorch default init 0.25)
        "prelu1_a": jnp.float32(0.25),
        "prelu2_a": jnp.float32(0.25),
    }

    x = jax.random.normal(keys[11], (B, Cin, T), jnp.float32)

    ref = _reference_forward(x, params)

    # f32 path with an explicit small time tile so the (batch, time) grid is
    # actually exercised (grid = (2, 2)).
    out = resblock_forward(x, params, time_tile=24)
    out = jax.block_until_ready(out)
    np.testing.assert_allclose(np.asarray(out), np.asarray(ref),
                               rtol=1e-5, atol=1e-5)
    assert out.shape == (B, Cout, T // 3)

    # bf16 MXU-operand path (all generations), auto time tile, looser tolerance.
    out_bf16 = resblock_forward(x, params, compute_dtype=jnp.bfloat16)
    out_bf16 = jax.block_until_ready(out_bf16)
    np.testing.assert_allclose(np.asarray(out_bf16), np.asarray(ref),
                               rtol=5e-2, atol=5e-2)

    print("KERNEL_OK")
</pallas_src>

<mosaic_0001>
module attributes {stable_mosaic.version = 11 : i64} {
  func.func @_resblock_kernel(%arg0: i32, %arg1: i32, %arg2: memref<2xf32, #tpu.memory_space<smem>>, %arg3: memref<1x24x4xf32, #tpu.memory_space<vmem>>, %arg4: memref<4x136xf32, #tpu.memory_space<vmem>>, %arg5: memref<8x8xf32, #tpu.memory_space<vmem>>, %arg6: memref<1x8xf32, #tpu.memory_space<vmem>>, %arg7: memref<1x8xf32, #tpu.memory_space<vmem>>, %arg8: memref<1x8x8xf32, #tpu.memory_space<vmem>>, %arg9: memref<24x8xf32, #tpu.memory_space<vmem>>) attributes {dimension_semantics = [#tpu.dimension_semantics<parallel>, #tpu.dimension_semantics<parallel>], iteration_bounds = array<i64: 2, 2>, scalar_prefetch = 1 : i64, scratch_operands = 1 : i64, tpu.core_type = #tpu.core_type<tc>, window_params = [{transform_indices = @transform_0, window_bounds = array<i64: 1, 24, 4>}, {pipeline_mode = #tpu.pipeline_mode<synchronous>, transform_indices = @transform_1, window_bounds = array<i64: 4, 136>}, {pipeline_mode = #tpu.pipeline_mode<synchronous>, transform_indices = @transform_2, window_bounds = array<i64: 8, 8>}, {pipeline_mode = #tpu.pipeline_mode<synchronous>, transform_indices = @transform_3, window_bounds = array<i64: 1, 8>}, {pipeline_mode = #tpu.pipeline_mode<synchronous>, transform_indices = @transform_4, window_bounds = array<i64: 1, 8>}, {transform_indices = @transform_5, window_bounds = array<i64: 1, 8, 8>}]} {
    %c0 = arith.constant 0 : index
    %c0_0 = arith.constant 0 : index
    %c0_1 = arith.constant 0 : index
    %0 = vector.load %arg3[%c0, %c0_0, %c0_1] : memref<1x24x4xf32, #tpu.memory_space<vmem>>, vector<1x24x4xf32>
    %1 = vector.shape_cast %0 : vector<1x24x4xf32> to vector<24x4xf32>
    %c0_2 = arith.constant 0 : index
    %c0_3 = arith.constant 0 : index
    %2 = vector.load %arg4[%c0_2, %c0_3] : memref<4x136xf32, #tpu.memory_space<vmem>>, vector<4x136xf32>
    %cst = arith.constant dense<0.000000e+00> : vector<24x136xf32>
    %3 = tpu.matmul %1, %2, %cst {dimension_numbers = #tpu.dot_dimension_numbers<[1], [0], [0], [1], [0, 0, 1, 1], [], []>} : vector<24x4xf32>, vector<4x136xf32>, vector<24x136xf32> -> vector<24x136xf32>
    %4 = vector.extract_strided_slice %3 {offsets = [0, 0], sizes = [24, 8], strides = [1, 1]} : vector<24x136xf32> to vector<24x8xf32>
    %c0_4 = arith.constant 0 : index
    %c0_5 = arith.constant 0 : index
    %5 = vector.load %arg6[%c0_4, %c0_5] : memref<1x8xf32, #tpu.memory_space<vmem>>, vector<1x8xf32>
    %6 = vector.broadcast %5 : vector<1x8xf32> to vector<24x8xf32>
    %7 = arith.addf %4, %6 : vector<24x8xf32>
    %8 = vector.extract_strided_slice %3 {offsets = [0, 128], sizes = [24, 8], strides = [1, 1]} : vector<24x136xf32> to vector<24x8xf32>
    %c0_6 = arith.constant 0 : index
    %9 = memref.load %arg2[%c0_6] : memref<2xf32, #tpu.memory_space<smem>>
    %cst_7 = arith.constant 0.000000e+00 : f32
    %10 = vector.broadcast %cst_7 : f32 to vector<24x8xf32>
    %11 = arith.cmpf oge, %7, %10 : vector<24x8xf32>
    %12 = vector.broadcast %9 : f32 to vector<24x8xf32>
    %13 = arith.mulf %12, %7 : vector<24x8xf32>
    %14 = arith.select %11, %7, %13 : vector<24x8xi1>, vector<24x8xf32>
    %c0_8 = arith.constant 0 : index
    %c0_9 = arith.constant 0 : index
    %15 = vector.load %arg5[%c0_8, %c0_9] : memref<8x8xf32, #tpu.memory_space<vmem>>, vector<8x8xf32>
    %cst_10 = arith.constant dense<0.000000e+00> : vector<24x8xf32>
    %16 = tpu.matmul %14, %15, %cst_10 {dimension_numbers = #tpu.dot_dimension_numbers<[1], [0], [0], [1], [0, 0, 1, 1], [], []>} : vector<24x8xf32>, vector<8x8xf32>, vector<24x8xf32> -> vector<24x8xf32>
    %c0_11 = arith.constant 0 : index
    %c0_12 = arith.constant 0 : index
    %17 = vector.load %arg7[%c0_11, %c0_12] : memref<1x8xf32, #tpu.memory_space<vmem>>, vector<1x8xf32>
    %18 = vector.broadcast %17 : vector<1x8xf32> to vector<24x8xf32>
    %19 = arith.addf %16, %18 : vector<24x8xf32>
    %20 = arith.addf %19, %8 : vector<24x8xf32>
    %c1 = arith.constant 1 : index
    %21 = memref.load %arg2[%c1] : memref<2xf32, #tpu.memory_space<smem>>
    %cst_13 = arith.constant 0.000000e+00 : f32
    %22 = vector.broadcast %cst_13 : f32 to vector<24x8xf32>
    %23 = arith.cmpf oge, %20, %22 : vector<24x8xf32>
    %24 = vector.broadcast %21 : f32 to vector<24x8xf32>
    %25 = arith.mulf %24, %20 : vector<24x8xf32>
    %26 = arith.select %23, %20, %25 : vector<24x8xi1>, vector<24x8xf32>
    %c0_14 = arith.constant 0 : index
    %c0_15 = arith.constant 0 : index
    %27 = vector.load %arg9[%c0_14, %c0_15] : memref<24x8xf32, #tpu.memory_space<vmem>>, vector<24x8xf32>
    tpu.vector_store %arg9[%c0_14, %c0_15], %26 {strides = array<i32>} : memref<24x8xf32, #tpu.memory_space<vmem>>, vector<24x8xf32>,
    %c0_16 = arith.constant 0 : index
    %c0_17 = arith.constant 0 : index
    %28 = tpu.strided_load %arg9[%c0_16, %c0_17] {strides = array<i32: 3, 1>} : memref<24x8xf32, #tpu.memory_space<vmem>>, vector<8x8xf32>
    %c1_18 = arith.constant 1 : index
    %c0_19 = arith.constant 0 : index
    %29 = tpu.strided_load %arg9[%c1_18, %c0_19] {strides = array<i32: 3, 1>} : memref<24x8xf32, #tpu.memory_space<vmem>>, vector<8x8xf32>
    %c2 = arith.constant 2 : index
    %c0_20 = arith.constant 0 : index
    %30 = tpu.strided_load %arg9[%c2, %c0_20] {strides = array<i32: 3, 1>} : memref<24x8xf32, #tpu.memory_space<vmem>>, vector<8x8xf32>
    %31 = arith.maximumf %28, %29 : vector<8x8xf32>
    %32 = arith.maximumf %31, %30 : vector<8x8xf32>
    %c0_21 = arith.constant 0 : index
    %c0_22 = arith.constant 0 : index
    %c0_23 = arith.constant 0 : index
    %33 = vector.load %arg8[%c0_21, %c0_22, %c0_23] : memref<1x8x8xf32, #tpu.memory_space<vmem>>, vector<1x8x8xf32>
    %34 = vector.shape_cast %33 : vector<1x8x8xf32> to vector<8x8xf32>
    %35 = vector.shape_cast %32 : vector<8x8xf32> to vector<1x8x8xf32>
    tpu.vector_store %arg8[%c0_21, %c0_22, %c0_23], %35 {strides = array<i32>} : memref<1x8x8xf32, #tpu.memory_space<vmem>>, vector<1x8x8xf32>,
    return
  }
  func.func @transform_0(%arg0: i32, %arg1: i32, %arg2: memref<2xf32, #tpu.memory_space<smem>>) -> (i32, i32, i32) {
    %c0_i32 = arith.constant 0 : i32
    %c0_i32_0 = arith.constant 0 : i32
    return %arg0, %arg1, %c0_i32 : i32, i32, i32
  }
  func.func @transform_1(%arg0: i32, %arg1: i32, %arg2: memref<2xf32, #tpu.memory_space<smem>>) -> (i32, i32) {
    %c0_i32 = arith.constant 0 : i32
    %c0_i32_0 = arith.constant 0 : i32
    %c0_i32_1 = arith.constant 0 : i32
    return %c0_i32, %c0_i32_0 : i32, i32
  }
  func.func @transform_2(%arg0: i32, %arg1: i32, %arg2: memref<2xf32, #tpu.memory_space<smem>>) -> (i32, i32) {
    %c0_i32 = arith.constant 0 : i32
    %c0_i32_0 = arith.constant 0 : i32
    %c0_i32_1 = arith.constant 0 : i32
    return %c0_i32, %c0_i32_0 : i32, i32
  }
  func.func @transform_3(%arg0: i32, %arg1: i32, %arg2: memref<2xf32, #tpu.memory_space<smem>>) -> (i32, i32) {
    %c0_i32 = arith.constant 0 : i32
    %c0_i32_0 = arith.constant 0 : i32
    %c0_i32_1 = arith.constant 0 : i32
    return %c0_i32, %c0_i32_0 : i32, i32
  }
  func.func @transform_4(%arg0: i32, %arg1: i32, %arg2: memref<2xf32, #tpu.memory_space<smem>>) -> (i32, i32) {
    %c0_i32 = arith.constant 0 : i32
    %c0_i32_0 = arith.constant 0 : i32
    %c0_i32_1 = arith.constant 0 : i32
    return %c0_i32, %c0_i32_0 : i32, i32
  }
  func.func @transform_5(%arg0: i32, %arg1: i32, %arg2: memref<2xf32, #tpu.memory_space<smem>>) -> (i32, i32, i32) {
    %c0_i32 = arith.constant 0 : i32
    %c0_i32_0 = arith.constant 0 : i32
    return %arg0, %arg1, %c0_i32 : i32, i32, i32
  }
}

</mosaic_0001>

<bundles_post_ra>
// kernel: tpu_custom_call.1
= control target key start
LH: loop header
LB: loop body
LE: loop exit
PB: predicated region body
PF: predicated region fallthrough
CT: control target
= control target key end

     0   :  { %s860_s0 = inlined_call_operand.vmem [shape: f32[2], index: 0, kind: input, shape index: {}]   ;;  %s861_s1 = inlined_call_operand.vmem [shape: f32[2,48,4], index: 1, kind: input, shape index: {}]   ;;  %s862_s2 = inlined_call_operand.vmem [shape: f32[4,136], index: 2, kind: input, shape index: {}]   ;;  %s863_s3 = inlined_call_operand.vmem [shape: f32[8,8], index: 3, kind: input, shape index: {}]   ;;  %s864_s4 = inlined_call_operand.vmem [shape: f32[1,8], index: 4, kind: input, shape index: {}]   ;;  %s865_s5 = inlined_call_operand.vmem [shape: f32[1,8], index: 5, kind: input, shape index: {}]   ;;  %s866_s6 = inlined_call_operand.vmem [shape: f32[2,16,8], index: 6, kind: output, shape index: {}]  }
   0x1   :  { %s11_s23 = sshll.u32 %s860_s0, 4  ;;  %s12_s23 = int_to_ptr.vmem [resolvable:$true] %s11_s23 }
   0x2   :  { %s683_s24 = scalar_lea.vmem %s12_s23, 16  ;;  %p688_p1 = scmp.lt.s32.totalorder %s12_s23, %s12_s23 }
   0x3   :  { %p684_p0 = scmp.ne.s32.totalorder %s12_s23, %s683_s24  ;;  %p689_p2 = scmp.lt.s32.totalorder %s683_s24, %s683_s24 }
   0x5   :  { %p690_p3 = por %p689_p2, %p688_p1 }
   0x7   :  { %p691_p4 = pnand %p690_p3, %p684_p0 }
   0x9   :  { %694 = shalt.err (!%p691_p4)  }
   0xa   :  { %s737_s25 = smov [#allocation4]  }
   0xb   :  { %14 = dma.vmem_to_smem %s12_s23, 16, %s737_s25, [#allocation3] }
   0xc   :  { %715 = dma.done.wait [#allocation3], 16 }
   0xd   :  { %716 = vsyncadd [#allocation3], 4294967280 }
   0xe   :  { %16 = sfence }
   0xf   :  { %s778_s26 = smov 0   ;;  %s780_s27 = smov 0  }
  0x10   :  { %s782_s28 = smov 0   ;;  %s784_s0 = smov 0  }
  0x11   :  { %s786_s29 = smov 0  }
  0x12 LB: > { %s31_s30 = sadd.s32 1, %s727_s28  ;;  %s34_s7 = sadd.s32 1, %s731_s0  ;;  %s735_s29 = sphi %s786_s29, %s22_s29   ;;  %s731_s0 = sphi %s784_s0, %s870_s0   ;;  %s727_s28 = sphi %s782_s28, %s869_s28   ;;  %s723_s27 = sphi %s780_s27, %s868_s27   ;;  %s719_s26 = sphi %s778_s26, %s867_s26  }
  0x13   : > { %p32_p5 = scmp.ge.s32.totalorder %s31_s30, 2  ;;  %p606_p6 = scmp.ge.s32.totalorder %s735_s29, 1 }
  0x14   : > { %p215_p7 = scmp.lt.s32.totalorder %s735_s29, 5 }
  0x15   : > { %s872_s30 = smov (%p32_p5, %s31_s30), 0  ;;  %s874_s7 = smov (!%p32_p5, %s34_s7), %s731_s0 }
  0x16   : > { %p216_p8 = pnand %p606_p6, %p215_p7  ;;  %p36_p9 = scmp.ge.s32.totalorder %s874_s7, 2 }
  0x17   : > { %s250_s10 = smul.u32 (!%p216_p8), 3, %s719_s26  ;;  %p251_p10 = scmp.lt.s32.totalorder (!%p216_p8), %s723_s27, 1 }
  0x18   : > { %s876_s7 = smov (%p36_p9, %s874_s7), 0  ;;  %219 = sbr.rel (%p216_p8) target bundleno = 455 (0x1c7), region = 40 }
  0x19   : > { %p253_p11 = scmp.lt.s32.totalorder (!%p216_p8), %s250_s10, 5  ;;  %s382_s19 = sld [smem:[#allocation4]] (!%p216_p8) }
  0x1a   : > { %s620_s22 = sld [smem:[#allocation4 + $0x1]] (!%p216_p8)  ;;  %p262_p12 = scmp.lt.s32.totalorder (!%p216_p8), %s719_s26, 1 }
  0x1d   : > { %v271_v0 = vld [vmem:[%s862_s2] sm:$0xff]  ;;  %vm284_vm0 = vcmask 1043456   ;;  %v738_v2 = vmov 0.0   ;;  %s878_s27 = smov (!%p251_p10, %s723_s27), 1  ;;  %s880_s10 = smov (!%p253_p11, %s250_s10), 5  ;;  %vm274_vm1 = vcmask 31744  }
  0x1e   : > { %v273_v1 = vcombine.high %v271_v0, %v271_v0  ;;  %353 = vmatprep.mubr.f32.mxu0 %v738_v2  ;;  %627 = vmatprep.subr.mxu1 %v738_v2  ;;  %s638_s11 = smul.u32 6, %s878_s27  ;;  %v393_v6 = vld [vmem:[%s863_s3] sm:$0xff]  ;;  %vm739_vm2 = vmmov 0   ;;  %vm401_vm4 = vcmask 64512   ;;  %s882_s26 = smov (!%p262_p12, %s719_s26), 1 }
  0x1f   : > { %628 = vmatpush3.msra.mxu1 %v393_v6  ;;  %629 = vmatprep.mubr.msk.f32.mxu1 %vm739_vm2, %v738_v2  ;;  %v615_v7 = vld [vmem:[%s864_s4] ss:$0 sm:$0xff]  ;;  %v386_v9 = vstv %s382_s19  ;;  %s608_s25 = sshll.u32 %s878_s27, 1 }
  0x20   : > { %610 = vmatprep.subr.msk.mxu0 %vm284_vm0, %v273_v1  ;;  %s256_s12 = sadd.s32 %s638_s11, %s880_s10  ;;  %v616_v23 = vld [vmem:[%s865_s5] ss:$0 sm:$0xff]  ;;  %v498_v26 = vstv %s620_s22  ;;  %s265_s8 = sadd.s32 %s608_s25, %s882_s26 }
  0x21   : > { %611 = vmatpush1.msk.msra.mxu0 %vm284_vm0, %v271_v0  ;;  %s607_s13 = sshll.u32 %s256_s12, 3  ;;  %s609_s9 = sshll.u32 %s265_s8, 3 }
  0x22   : > { %s258_s16 = scalar_lea.vmem %s861_s1, %s607_s13  ;;  %s267_s12 = scalar_lea.vmem %s866_s6, %s609_s9 }
  0x23   : > { %v268_v3 = vld [vmem:[%s258_s16] sm:$0xff]  ;;  %v269_v4 = vld [vmem:[%s258_s16 + $0x8] sm:$0xff]  ;;  %v270_v5 = vld [vmem:[%s258_s16 + $0x10] sm:$0xff] }
  0x24   : > { %612 = vmatmul.mubr.msk.f32.vlgmr.msra.gmra.mxu0 %vm274_vm1, %v268_v3 }
  0x25   : > { %359 = vmatprep.mubr.f32.mxu0 %v738_v2 }
  0x28   : > { %613 = vmatmul.mubr.msk.f32.gmra.mxu0 %vm274_vm1, %v269_v4 }
  0x29   : > { %365 = vmatprep.mubr.f32.mxu0 %v738_v2 }
  0x2c   : > { %614 = vmatmul.mubr.msk.f32.gmra.mxu0 %vm274_vm1, %v270_v5 }
  0xe4   : > { %v355_v8 = vpop.f32.mrf.mxu0 }
  0xe5   : > { %v379_v10 = vadd.f32 %v615_v7, %v355_v8 }
  0xe6   : > { %v357_v11 = vpop.f32.mrf.mxu0 }
  0xe7   : > { %vm383_vm3 = vcmp.ge.f32.partialorder %v379_v10, 0.0  ;;  %v387_v12 = vmul.f32 %v386_v9, %v379_v10 }
  0xe8   : > { %v361_v13 = vpop.f32.mrf.mxu0 }
  0xe9   : > { %v380_v14 = vadd.f32 %v615_v7, %v361_v13  ;;  %v390_v15 = vsel %vm383_vm3, %v379_v10, %v387_v12 }
  0xea   : > { %v363_v16 = vpop.f32.mrf.mxu0  ;;  %630 = vmatmul.mubr.msk.f32.vlgmr.msra.gmra.mxu1 %vm401_vm4, %v390_v15 }
  0xeb   : > { %vm384_vm5 = vcmp.ge.f32.partialorder %v380_v14, 0.0  ;;  %v388_v17 = vmul.f32 %v386_v9, %v380_v14  ;;  %632 = vmatprep.mubr.msk.f32.mxu1 %vm739_vm2, %v738_v2 }
  0xec   : > { %v367_v18 = vpop.f32.mrf.mxu0 }
  0xed   : > { %v381_v19 = vadd.f32 %v615_v7, %v367_v18  ;;  %v391_v20 = vsel %vm384_vm5, %v380_v14, %v388_v17 }
  0xee   : > { %633 = vmatmul.mubr.msk.f32.gmra.mxu1 %vm401_vm4, %v391_v20  ;;  %v369_v38 = vpop.f32.mrf.mxu0 }
  0xef   : > { %vm385_vm6 = vcmp.ge.f32.partialorder %v381_v19, 0.0  ;;  %v389_v21 = vmul.f32 %v386_v9, %v381_v19  ;;  %635 = vmatprep.mubr.msk.f32.mxu1 %vm739_vm2, %v738_v2 }
  0xf1   : > { %v392_v22 = vsel %vm385_vm6, %v381_v19, %v389_v21 }
  0xf2   : > { %636 = vmatmul.mubr.msk.f32.gmra.mxu1 %vm401_vm4, %v392_v22 }
 0x1aa   : > { %v477_v24 = vpop.f32.mrf.mxu1 }
 0x1ab   : > { %v478_v25 = vadd.f32 %v616_v23, %v477_v24 }
 0x1ac   : > { %v631_v27 = vpop.f32.mrf.mxu1 }
 0x1ad   : > { %v491_v28 = vadd.f32 %v478_v25, %v357_v11 }
 0x1ae   : > { %v482_v29 = vpop.f32.mrf.mxu1 }
 0x1af   : > { %vm495_vm7 = vcmp.ge.f32.partialorder %v491_v28, 0.0  ;;  %v499_v30 = vmul.f32 %v498_v26, %v491_v28  ;;  %v483_v31 = vadd.f32 %v616_v23, %v482_v29 }
 0x1b0   : > { %v634_v32 = vpop.f32.mrf.mxu1 }
 0x1b1   : > { %v502_v33 = vsel %vm495_vm7, %v491_v28, %v499_v30  ;;  %v492_v34 = vadd.f32 %v483_v31, %v363_v16 }
 0x1b2   : > { %505 = vst.msk [vmem:[#allocation2] sm:$0xff] %vm401_vm4, %v502_v33  ;;  %v487_v35 = vpop.f32.mrf.mxu1 }
 0x1b3   : > { %vm496_vm8 = vcmp.ge.f32.partialorder %v492_v34, 0.0  ;;  %v500_v36 = vmul.f32 %v498_v26, %v492_v34  ;;  %v488_v37 = vadd.f32 %v616_v23, %v487_v35 }
 0x1b4   : > { %v637_v39 = vpop.f32.mrf.mxu1 }
 0x1b5   : > { %v503_v40 = vsel %vm496_vm8, %v492_v34, %v500_v36  ;;  %v493_v41 = vadd.f32 %v488_v37, %v369_v38 }
 0x1b6   : > { %506 = vst.msk [vmem:[#allocation2 + $0x8] sm:$0xff] %vm401_vm4, %v503_v40 }
 0x1b7   : > { %vm497_vm9 = vcmp.ge.f32.partialorder %v493_v41, 0.0  ;;  %v501_v42 = vmul.f32 %v498_v26, %v493_v41 }
 0x1b9   : > { %v504_v43 = vsel %vm497_vm9, %v493_v41, %v501_v42 }
 0x1ba   : > { %507 = vst.msk [vmem:[#allocation2 + $0x10] sm:$0xff] %vm401_vm4, %v504_v43 }
 0x1c1   : > { %v508_v44 = vld [vmem:[#allocation2] ss:$3 sm:$0xff]  ;;  %v510_v45 = vld [vmem:[#allocation2 + $0x1] ss:$3 sm:$0xff]  ;;  %v512_v47 = vld [vmem:[#allocation2 + $0x2] ss:$3 sm:$0xff] }
 0x1c2   : > { %v513_v46 = vmax.f32 %v508_v44, %v510_v45 }
 0x1c4   : > { %v514_v48 = vmax.f32 %v513_v46, %v512_v47 }
 0x1c6   : > { %515 = vst.msk [vmem:[%s267_s12] sm:$0xff] %vm401_vm4, %v514_v48 }
 0x1c7 PF: > { %s22_s29 = sadd.s32 1, %s735_s29   ;;  %s867_s26 = smov %s727_s28 }
 0x1c8   : > { %p19_p13 = scmp.ge.s32.totalorder %s22_s29, 6   ;;  %s868_s27 = smov %s731_s0 }
 0x1c9   : > { %s869_s28 = smov %s872_s30  ;;  %s870_s0 = smov %s876_s7 }
 0x1ca   :  { %21 = sbr.rel (!%p19_p13) target bundleno = 18 (0x12), region = 72 }

</bundles_post_ra>
